<compile_context>
chip_gen: v7x
topology: tpu7x:2x2x1
jax: 0.10.0
libtpu: 0.0.40
codegen_flags: <defaults>
</compile_context>

<pallas_src>
import jax
import jax.numpy as jnp
from jax.experimental import pallas as pl
from jax.experimental.pallas import tpu as pltpu

HIDDEN = 400  # from nn.Linear(input_dim, 400)


def _round_up(x, m):
    return ((x + m - 1) // m) * m


def discriminator_kernel(x_ref, w1_ref, b1_ref, w2_ref, b2_ref, o_ref):
    # Layer 1: bf16 operands on the MXU, f32 accumulation.
    h = jnp.dot(x_ref[...], w1_ref[...], preferred_element_type=jnp.float32)
    h = jnp.maximum(h + b1_ref[...], 0.0)              # bias + ReLU (VPU, f32)
    # Layer 2 (H -> 1): VPU multiply + cross-lane reduce (XLU) instead of a
    # skinny N=1 MXU matmul — keeps the MXU for the useful first layer.
    y = jnp.sum(h * w2_ref[...], axis=-1, keepdims=True) + b2_ref[0, 0]
    # Sigmoid: exp and approx reciprocal both issue on the EUP slot.
    o_ref[...] = pl.reciprocal(1.0 + jnp.exp(-y), approx=True).astype(o_ref.dtype)


def discriminator_forward(x, w1, b1, w2, b2, *, tb=None):
    """x: (B, D) f32, w1: (D, 400), b1: (1, 400) or (400,), w2: (400, 1), b2 scalar-ish.
    Returns (B, 1) f32 == sigmoid(relu(x @ w1 + b1) @ w2 + b2)."""
    B, D = x.shape
    H = w1.shape[1]
    Hp = _round_up(H, 128)

    # ---- wrapper-side layout prep (cheap, fused by XLA) -------------------
    w1p = jnp.zeros((D, Hp), jnp.bfloat16).at[:, :H].set(w1.astype(jnp.bfloat16))
    b1p = jnp.zeros((1, Hp), jnp.float32).at[:, :H].set(jnp.reshape(b1, (1, H)).astype(jnp.float32))
    w2p = jnp.zeros((1, Hp), jnp.float32).at[:, :H].set(jnp.reshape(w2, (1, H)).astype(jnp.float32))
    b2p = jnp.reshape(b2, (1, 1)).astype(jnp.float32)

    # Batch tile: large & 8-aligned; pad the batch rather than assert on it.
    if tb is None:
        tb = min(256, _round_up(B, 8))
    tb = max(8, _round_up(tb, 8))
    Bp = _round_up(B, tb)
    xp = x.astype(jnp.bfloat16)
    if Bp != B:
        xp = jnp.zeros((Bp, D), jnp.bfloat16).at[:B].set(xp)

    # Rough VMEM footprint (double-buffered inputs + f32 h intermediate);
    # keep the scoped limit comfortably under the v7x 64 MiB physical VMEM.
    # TODO(synk): for very large input_dim, single-buffer the grid-invariant
    # weight blocks (pipeline_mode=pl.Buffered(1)) to halve their footprint.
    est = 2 * (tb * D * 2 + D * Hp * 2 + Hp * 4 + Hp * 4 + tb * 4) + tb * Hp * 4
    vmem_limit = int(min(max(4 * est, 16 << 20), 48 << 20))

    out = pl.pallas_call(
        discriminator_kernel,
        out_shape=jax.ShapeDtypeStruct((Bp, 1), jnp.float32),
        grid_spec=pltpu.PrefetchScalarGridSpec(
            num_scalar_prefetch=0,
            grid=(Bp // tb,),
            in_specs=[
                pl.BlockSpec((tb, D), lambda i: (i, 0)),    # x tile over batch
                pl.BlockSpec((D, Hp), lambda i: (0, 0)),    # w1 (grid-invariant)
                pl.BlockSpec((1, Hp), lambda i: (0, 0)),    # b1
                pl.BlockSpec((1, Hp), lambda i: (0, 0)),    # w2 as a row
                pl.BlockSpec(memory_space=pltpu.MemorySpace.SMEM),  # b2 scalar
            ],
            out_specs=pl.BlockSpec((tb, 1), lambda i: (i, 0)),
        ),
        compiler_params=pltpu.CompilerParams(
            dimension_semantics=("parallel",),
            vmem_limit_bytes=vmem_limit,
        ),
    )(xp, w1p, b1p, w2p, b2p)
    return out[:B]


def init_params(key, input_dim):
    """Deterministic init mimicking torch.nn.Linear defaults
    (uniform(-1/sqrt(fan_in), 1/sqrt(fan_in)))."""
    k1, k2, k3, k4 = jax.random.split(key, 4)
    bound1 = 1.0 / jnp.sqrt(jnp.float32(input_dim))
    bound2 = 1.0 / jnp.sqrt(jnp.float32(HIDDEN))
    w1 = jax.random.uniform(k1, (input_dim, HIDDEN), jnp.float32, -bound1, bound1)
    b1 = jax.random.uniform(k2, (1, HIDDEN), jnp.float32, -bound1, bound1)
    w2 = jax.random.uniform(k3, (HIDDEN, 1), jnp.float32, -bound2, bound2)
    b2 = jax.random.uniform(k4, (1, 1), jnp.float32, -bound2, bound2)
    return w1, b1, w2, b2


if __name__ == "__main__":
    key = jax.random.PRNGKey(0)
    k_x, k_p = jax.random.split(key)

    # Small shapes; B deliberately not a multiple of 8 to exercise the
    # batch-padding path.
    B, D = 12, 32
    x = jax.random.normal(k_x, (B, D), jnp.float32)
    w1, b1, w2, b2 = init_params(k_p, D)

    out = discriminator_forward(x, w1, b1, w2, b2)
    out = jax.block_until_ready(out)

    # Pure-JAX f32 reference (kernel uses bf16 MXU operands -> loose tol).
    ref = jax.nn.sigmoid(jnp.maximum(x @ w1 + b1, 0.0) @ w2 + b2)
    assert out.shape == (B, 1)
    assert jnp.allclose(out, ref, atol=2e-2, rtol=0), (
        f"max abs err = {jnp.max(jnp.abs(out - ref))}")

    print("KERNEL_OK")
</pallas_src>

<mosaic_0001>
module attributes {stable_mosaic.version = 11 : i64} {
  func.func @discriminator_kernel(%arg0: i32, %arg1: memref<16x32xbf16, #tpu.memory_space<vmem>>, %arg2: memref<32x512xbf16, #tpu.memory_space<vmem>>, %arg3: memref<1x512xf32, #tpu.memory_space<vmem>>, %arg4: memref<1x512xf32, #tpu.memory_space<vmem>>, %arg5: memref<1x1xf32, #tpu.memory_space<smem>>, %arg6: memref<16x1xf32, #tpu.memory_space<vmem>>) attributes {dimension_semantics = [#tpu.dimension_semantics<parallel>], iteration_bounds = array<i64: 1>, scalar_prefetch = 0 : i64, scratch_operands = 0 : i64, tpu.core_type = #tpu.core_type<tc>, window_params = [{transform_indices = @transform_0, window_bounds = array<i64: 16, 32>}, {pipeline_mode = #tpu.pipeline_mode<synchronous>, transform_indices = @transform_1, window_bounds = array<i64: 32, 512>}, {pipeline_mode = #tpu.pipeline_mode<synchronous>, transform_indices = @transform_2, window_bounds = array<i64: 1, 512>}, {pipeline_mode = #tpu.pipeline_mode<synchronous>, transform_indices = @transform_3, window_bounds = array<i64: 1, 512>}, {transform_indices = @transform_4, window_bounds = array<i64: 1, 1>}, {transform_indices = @transform_5, window_bounds = array<i64: 16, 1>}]} {
    %c0 = arith.constant 0 : index
    %c0_0 = arith.constant 0 : index
    %0 = vector.load %arg1[%c0, %c0_0] : memref<16x32xbf16, #tpu.memory_space<vmem>>, vector<16x32xbf16>
    %c0_1 = arith.constant 0 : index
    %c0_2 = arith.constant 0 : index
    %1 = vector.load %arg2[%c0_1, %c0_2] : memref<32x512xbf16, #tpu.memory_space<vmem>>, vector<32x512xbf16>
    %cst = arith.constant dense<0.000000e+00> : vector<16x512xf32>
    %2 = tpu.matmul %0, %1, %cst {dimension_numbers = #tpu.dot_dimension_numbers<[1], [0], [0], [1], [0, 0, 1, 1], [], []>} : vector<16x32xbf16>, vector<32x512xbf16>, vector<16x512xf32> -> vector<16x512xf32>
    %c0_3 = arith.constant 0 : index
    %c0_4 = arith.constant 0 : index
    %3 = vector.load %arg3[%c0_3, %c0_4] : memref<1x512xf32, #tpu.memory_space<vmem>>, vector<1x512xf32>
    %4 = vector.broadcast %3 : vector<1x512xf32> to vector<16x512xf32>
    %5 = arith.addf %2, %4 : vector<16x512xf32>
    %cst_5 = arith.constant 0.000000e+00 : f32
    %6 = vector.broadcast %cst_5 : f32 to vector<16x512xf32>
    %7 = arith.maximumf %5, %6 : vector<16x512xf32>
    %c0_6 = arith.constant 0 : index
    %c0_7 = arith.constant 0 : index
    %8 = vector.load %arg4[%c0_6, %c0_7] : memref<1x512xf32, #tpu.memory_space<vmem>>, vector<1x512xf32>
    %9 = vector.broadcast %8 : vector<1x512xf32> to vector<16x512xf32>
    %10 = arith.mulf %7, %9 : vector<16x512xf32>
    %cst_8 = arith.constant dense<0.000000e+00> : vector<16xf32>
    %11 = vector.multi_reduction <add>, %10, %cst_8 [1] : vector<16x512xf32> to vector<16xf32>
    %12 = vector.shape_cast %11 : vector<16xf32> to vector<16x1xf32>
    %c0_9 = arith.constant 0 : index
    %c0_10 = arith.constant 0 : index
    %13 = memref.load %arg5[%c0_9, %c0_10] : memref<1x1xf32, #tpu.memory_space<smem>>
    %14 = vector.broadcast %13 : f32 to vector<16x1xf32>
    %15 = arith.addf %12, %14 : vector<16x1xf32>
    %cst_11 = arith.constant 0.000000e+00 : f32
    %16 = vector.broadcast %cst_11 : f32 to vector<16x1xf32>
    %17 = arith.subf %16, %15 : vector<16x1xf32>
    %18 = math.exp %17 : vector<16x1xf32>
    %cst_12 = arith.constant 1.000000e+00 : f32
    %19 = vector.broadcast %cst_12 : f32 to vector<16x1xf32>
    %20 = arith.addf %19, %18 : vector<16x1xf32>
    %21 = tpu.reciprocal %20 {approx = true} : vector<16x1xf32> -> vector<16x1xf32>
    %c0_13 = arith.constant 0 : index
    %c0_14 = arith.constant 0 : index
    %22 = vector.load %arg6[%c0_13, %c0_14] : memref<16x1xf32, #tpu.memory_space<vmem>>, vector<16x1xf32>
    tpu.vector_store %arg6[%c0_13, %c0_14], %21 {strides = array<i32>} : memref<16x1xf32, #tpu.memory_space<vmem>>, vector<16x1xf32>,
    return
  }
  func.func @transform_0(%arg0: i32) -> (i32, i32) {
    %c0_i32 = arith.constant 0 : i32
    %c0_i32_0 = arith.constant 0 : i32
    return %arg0, %c0_i32 : i32, i32
  }
  func.func @transform_1(%arg0: i32) -> (i32, i32) {
    %c0_i32 = arith.constant 0 : i32
    %c0_i32_0 = arith.constant 0 : i32
    %c0_i32_1 = arith.constant 0 : i32
    return %c0_i32, %c0_i32_0 : i32, i32
  }
  func.func @transform_2(%arg0: i32) -> (i32, i32) {
    %c0_i32 = arith.constant 0 : i32
    %c0_i32_0 = arith.constant 0 : i32
    %c0_i32_1 = arith.constant 0 : i32
    return %c0_i32, %c0_i32_0 : i32, i32
  }
  func.func @transform_3(%arg0: i32) -> (i32, i32) {
    %c0_i32 = arith.constant 0 : i32
    %c0_i32_0 = arith.constant 0 : i32
    %c0_i32_1 = arith.constant 0 : i32
    return %c0_i32, %c0_i32_0 : i32, i32
  }
  func.func @transform_4(%arg0: i32) -> (i32, i32) {
    %c0_i32 = arith.constant 0 : i32
    %c0_i32_0 = arith.constant 0 : i32
    %c0_i32_1 = arith.constant 0 : i32
    return %c0_i32, %c0_i32_0 : i32, i32
  }
  func.func @transform_5(%arg0: i32) -> (i32, i32) {
    %c0_i32 = arith.constant 0 : i32
    %c0_i32_0 = arith.constant 0 : i32
    return %arg0, %c0_i32 : i32, i32
  }
}

</mosaic_0001>

<bundles_post_ra>
// kernel: tpu_custom_call.1
= control target key start
LH: loop header
LB: loop body
LE: loop exit
PB: predicated region body
PF: predicated region fallthrough
CT: control target
= control target key end

     0   :  { %11 = vsyncpa [#allocation4], 0  ;;  %s451_s0 = inlined_call_operand.hbm [shape: bf16[16,32], index: 0, kind: input, shape index: {}]   ;;  %s452_s1 = inlined_call_operand.hbm [shape: bf16[32,512], index: 1, kind: input, shape index: {}]   ;;  %s453_s2 = inlined_call_operand.vmem [shape: f32[1,512], index: 2, kind: input, shape index: {}]   ;;  %s454_s3 = inlined_call_operand.vmem [shape: f32[1,512], index: 3, kind: input, shape index: {}]   ;;  %s455_s4 = inlined_call_operand.<no memory space> [shape: f32[1,1], index: 4, kind: input, shape index: {}]   ;;  %s456_s5 = inlined_call_operand.vmem [shape: f32[16,1], index: 5, kind: output, shape index: {}]  }
   0x1   :  { %12 = vsyncpa [#allocation6], 0  ;;  %s375_s18 = smov [#allocation3]   ;;  %s327_s22 = scalar_lea.hbm %s451_s0, 128 }
   0x2   :  { %s18_s19 = sshll.u32 %s375_s18, 4  ;;  %p328_p0 = scmp.ne.s32.totalorder %s451_s0, %s327_s22  ;;  %s19_s19 = int_to_ptr.vmem [resolvable:$true] %s18_s19 }
   0x3   :  { %p331_p1 = scmp.lt.u32.totalorder %s327_s22, %s451_s0 }
   0x5   :  { %p333_p2 = pnand %p331_p1, %p328_p0 }
   0x7   :  { %336 = shalt.err (!%p333_p2)
}
   0x8   :  { %s337_s27 = scalar_lea.vmem %s19_s19, 128  ;;  %p342_p4 = scmp.lt.s32.totalorder %s19_s19, %s19_s19 }
   0x9   :  { %p338_p3 = scmp.ne.s32.totalorder %s19_s19, %s337_s27  ;;  %p343_p5 = scmp.lt.s32.totalorder %s337_s27, %s337_s27 }
   0xb   :  { %p344_p6 = por %p343_p5, %p342_p4 }
   0xd   :  { %p345_p7 = pnand %p344_p6, %p338_p3 }
   0xf   :  { %348 = shalt.err (!%p345_p7)
}
  0x10   :  { %s376_s28 = smov 64   ;;  %s377_s29 = smov 4  }
  0x11   :  { %24 = dma.hbm_to_vmem [thread:$0]  %s451_s0, 128, %s19_s19, [#allocation4], %s376_s28, %s376_s28, %s377_s29  }
  0x12   :  { %s378_s7 = smov [#allocation5]   ;;  %s349_s11 = scalar_lea.hbm %s452_s1, 1024 }
  0x13   :  { %s30_s8 = sshll.u32 %s378_s7, 4  ;;  %p350_p8 = scmp.ne.s32.totalorder %s452_s1, %s349_s11  ;;  %s31_s8 = int_to_ptr.vmem [resolvable:$true] %s30_s8 }
  0x14   :  { %p353_p9 = scmp.lt.u32.totalorder %s349_s11, %s452_s1 }
  0x16   :  { %p355_p10 = pnand %p353_p9, %p350_p8 }
  0x18   :  { %358 = shalt.err (!%p355_p10)
}
  0x19   :  { %s359_s16 = scalar_lea.vmem %s31_s8, 1024  ;;  %p364_p12 = scmp.lt.s32.totalorder %s31_s8, %s31_s8 }
  0x1a   :  { %p360_p11 = scmp.ne.s32.totalorder %s31_s8, %s359_s16  ;;  %p365_p13 = scmp.lt.s32.totalorder %s359_s16, %s359_s16 }
  0x1c   :  { %p366_p0 = por %p365_p13, %p364_p12 }
  0x1e   :  { %p367_p1 = pnand %p366_p0, %p360_p11 }
  0x20   :  { %370 = shalt.err (!%p367_p1)
}
  0x21   :  { %s379_s0 = smov 256   ;;  %s380_s17 = smov 16  }
  0x22   :  { %36 = dma.hbm_to_vmem [thread:$0]  %s452_s1, 1024, %s31_s8, [#allocation6], %s379_s0, %s379_s0, %s380_s17  }
  0x23   :  { %371 = dma.done.wait [#allocation4], 128  }
  0x24   :  { %372 = vsyncadd [#allocation4], 4294967168 }
  0x25   :  { %373 = dma.done.wait [#allocation6], 1024  }
  0x26   :  { %374 = vsyncadd [#allocation6], 4294966272  ;;  %v381_v0 = vmov 0   ;;  %v306_v1 = vld [vmem:[#allocation5 + $0x4] ss:$16 sps:$4 sm:$0xff]   ;;  %v318_v9 = vld [vmem:[#allocation3] sm:$0xff]   ;;  %v62_v10 = vlaneseq }
  0x27   :  { %163 = vmatprep.mubr.bf16.mxu0 %v381_v0  ;;  %206 = vmatprep.mubr.bf16.mxu1 %v381_v0  ;;  %v308_v2 = vld [vmem:[#allocation5 + $0xc] ss:$16 sps:$4 sm:$0xff]   ;;  %v310_v3 = vld [vmem:[#allocation5] ss:$16 sps:$4 sm:$0xff]   ;;  %v311_v4 = vld [vmem:[#allocation5 + $0x8] ss:$16 sps:$4 sm:$0xff]   ;;  %v266_v0 = vstv %s455_s4 }
  0x28   :  { %131 = vmatprep.subr.bf16.mxu0 %v306_v1  ;;  %174 = vmatprep.subr.bf16.mxu1 %v308_v2  ;;  %v312_v5 = vld [vmem:[#allocation5 + $0x24] ss:$16 sps:$4 sm:$0xff]   ;;  %v314_v6 = vld [vmem:[#allocation5 + $0x2c] ss:$16 sps:$4 sm:$0xff]   ;;  %v316_v7 = vld [vmem:[#allocation5 + $0x20] ss:$16 sps:$4 sm:$0xff]  }
  0x29   :  { %132 = vmatpush1.bf16.msra.mxu0 %v310_v3  ;;  %175 = vmatpush1.bf16.msra.mxu1 %v311_v4  ;;  %v317_v8 = vld [vmem:[#allocation5 + $0x28] ss:$16 sps:$4 sm:$0xff]   ;;  %vm127_vm0 = vcmask 261120   ;;  %v63_v11 = vshrl.u32 %v62_v10, 7  ;;  %vm279_vm1 = vcmask 7168  }
  0x2a   :  { %133 = vmatprep.subr.bf16.mxu0 %v312_v5  ;;  %176 = vmatprep.subr.bf16.mxu1 %v314_v6  ;;  %v60_v14 = vld [vmem:[%s453_s2] sm:$0xf] }
  0x2b   :  { %v64_v12 = vsub.s32 0, %v63_v11  ;;  %v72_v13 = vsub.s32 2, %v63_v11  ;;  %v68_v15 = vsub.s32 1, %v63_v11  ;;  %v76_v16 = vsub.s32 3, %v63_v11  ;;  %v225_v19 = vld [vmem:[%s454_s3] sm:$0xf] }
  0x2d   :  { %134 = vmatpush1.bf16.msra.mxu0 %v316_v7  ;;  %177 = vmatpush1.bf16.msra.mxu1 %v317_v8  ;;  %v65_v17 = vrot.slane %v60_v14, %v64_v12  ;;  %v73_v18 = vrot.slane %v60_v14, %v72_v13  ;;  %v69_v20 = vrot.slane %v60_v14, %v68_v15 }
  0x2e   :  { %v77_v21 = vrot.slane %v60_v14, %v76_v16  ;;  %v230_v25 = vrot.slane %v225_v19, %v64_v12  ;;  %v238_v29 = vrot.slane %v225_v19, %v72_v13  ;;  %v234_v31 = vrot.slane %v225_v19, %v68_v15 }
  0x2f   :  { %v242_v47 = vrot.slane %v225_v19, %v76_v16 }
  0x30   :  { %297 = vmatmul.mubr.msk.bf16.vlgmr.msra.gmra.mrb[0].mxu0 %vm127_vm0, %v318_v9  ;;  %298 = vmatmul.mubr.msk.bf16.vlgmr.msra.gmra.mrb[0].mxu1 %vm127_vm0, %v318_v9 }
 0x103   :  { %v165_v22 = vpop.f32.mrb[0].mxu0  ;;  %v208_v23 = vpop.f32.mrb[0].mxu1 }
 0x104   :  { %v166_v24 = vadd.f32 %v165_v22, %v65_v17  ;;  %v209_v26 = vadd.f32 %v208_v23, %v73_v18  ;;  %v167_v27 = vpop.f32.mrb[1].mxu0  ;;  %v210_v28 = vpop.f32.mrb[1].mxu1 }
 0x105   :  { %v168_v30 = vadd.f32 %v167_v27, %v69_v20  ;;  %v211_v32 = vadd.f32 %v210_v28, %v77_v21  ;;  %v169_v33 = vpop.f32.mrb[2].mxu0  ;;  %v212_v34 = vpop.f32.mrb[2].mxu1 }
 0x106   :  { %v217_v35 = vmax.f32 %v166_v24, 0.0  ;;  %v219_v36 = vmax.f32 %v209_v26, 0.0  ;;  %v170_v37 = vadd.f32 %v169_v33, %v65_v17  ;;  %v213_v38 = vadd.f32 %v212_v34, %v73_v18  ;;  %v171_v39 = vpop.f32.mrb[3].mxu0  ;;  %v214_v40 = vpop.f32.mrb[3].mxu1 }
 0x107   :  { %v218_v41 = vmax.f32 %v168_v30, 0.0  ;;  %v172_v42 = vadd.f32 %v171_v39, %v69_v20  ;;  %v215_v43 = vadd.f32 %v214_v40, %v77_v21  ;;  %v220_v45 = vmax.f32 %v211_v32, 0.0 }
 0x108   :  { %v247_v44 = vmul.f32 %v230_v25, %v217_v35  ;;  %v221_v46 = vmax.f32 %v170_v37, 0.0  ;;  %v249_v48 = vmul.f32 %v238_v29, %v219_v36  ;;  %v223_v50 = vmax.f32 %v213_v38, 0.0 }
 0x109   :  { %v248_v49 = vmul.f32 %v234_v31, %v218_v41  ;;  %v222_v51 = vmax.f32 %v172_v42, 0.0  ;;  %v224_v54 = vmax.f32 %v215_v43, 0.0  ;;  %v250_v58 = vmul.f32 %v242_v47, %v220_v45 }
 0x10a   :  { %v251_v52 = vmul.f32 %v230_v25, %v221_v46  ;;  %v253_v56 = vmul.f32 %v238_v29, %v223_v50 }
 0x10b   :  { %v252_v53 = vmul.f32 %v234_v31, %v222_v51  ;;  %v255_v55 = vadd.f32 %v248_v49, %v247_v44  ;;  %v254_v60 = vmul.f32 %v242_v47, %v224_v54 }
 0x10d   :  { %v260_v57 = vadd.f32 %v252_v53, %v251_v52  ;;  %v256_v59 = vadd.f32 %v255_v55, %v249_v48 }
 0x10f   :  { %v257_v61 = vadd.f32 %v256_v59, %v250_v58  ;;  %v261_v62 = vadd.f32 %v260_v57, %v253_v56 }
 0x111   :  { %258 = vadd.xlane.f32.xlu0 %v257_v61  ;;  %v262_v63 = vadd.f32 %v261_v62, %v254_v60 }
 0x115   :  { %263 = vadd.xlane.f32.xlu0 %v262_v63 }
 0x19e   :  { %v259_v1 = vpop.xlane.xlu0 %258 }
 0x19f   :  { %v267_v2 = vadd.f32 %v266_v0, %v259_v1 }
 0x1a1   :  { %v269_v3 = vsub.f32 0.0, %v267_v2 }
 0x1a2   :  { %v264_v4 = vpop.xlane.xlu0 %263 }
 0x1a3   :  { %v271_v5 = vmul.f32 1.442695, %v269_v3  ;;  %v268_v6 = vadd.f32 %v266_v0, %v264_v4 }
 0x1a5   :  { %319 = vpow2.f32 %v271_v5  ;;  %v270_v7 = vsub.f32 0.0, %v268_v6 }
 0x1a7   :  { %v273_v8 = vmul.f32 1.442695, %v270_v7 }
 0x1a9   :  { %321 = vpow2.f32 %v273_v8 }
 0x1af   :  { %v320_v9 = vpop.eup %319 }
 0x1b0   :  { %v275_v10 = vadd.f32 1.0, %v320_v9 }
 0x1b2   :  { %323 = vrcp.f32 %v275_v10 }
 0x1b3   :  { %v322_v11 = vpop.eup %321 }
 0x1b4   :  { %v276_v12 = vadd.f32 1.0, %v322_v11 }
 0x1b6   :  { %325 = vrcp.f32 %v276_v12 }
 0x1bc   :  { %v324_v13 = vpop.eup %323 }
 0x1bd   :  { %280 = vst.msk [vmem:[%s456_s5] sm:$0xff] %vm279_vm1, %v324_v13 }
 0x1c0   :  { %v326_v14 = vpop.eup %325 }
 0x1c1   :  { %281 = vst.msk [vmem:[%s456_s5 + $0x8] sm:$0xff] %vm279_vm1, %v326_v14 }
 0x1c2   :  { %286 = vsyncpa [#allocation4], 1 }
 0x1c3   :  { %287 = vsyncpa [#allocation6], 1 }

</bundles_post_ra>
